<compile_context>
chip_gen: v6e
topology: v6e:2x2x1
jax: 0.10.0
libtpu: 0.0.40
codegen_flags: <defaults>
</compile_context>

<pallas_src>
import functools

import jax
import jax.numpy as jnp
from jax.experimental import pallas as pl
from jax.experimental.pallas import tpu as pltpu

LANE = 128
VMEM_LIMIT = 32 * 1024 * 1024  # explicit: >= v5e's 16 MiB scoped default


def _round_up(x, m):
    return ((x + m - 1) // m) * m


def _pad2(a, rows, cols):
    return jnp.pad(a, ((0, rows - a.shape[0]), (0, cols - a.shape[1])))


# ----------------------------- Pallas kernels -----------------------------


def _gin_conv_kernel(n_ref, a_ref, xk_ref, xi_ref, w1_ref, b1_ref, w2_ref,
                     b2_ref, o_ref, psum_ref, psq_ref, acc_ref, *, eps, tm):
    """Tiled GINConv: acc += A_tile @ x_tile; finalize = MLP + ReLU + row-mask
    + fused per-row-tile BatchNorm partial statistics."""
    # program_id / num_programs bound at top level only (never inside pl.when).
    i = pl.program_id(0)
    k = pl.program_id(1)
    nk = pl.num_programs(1)
    row_off = i * tm

    @pl.when(k == 0)
    def _():
        acc_ref[...] = jnp.zeros_like(acc_ref)

    # int8 adjacency tile upcast to bf16 in-register -> native MXU path.
    a = a_ref[...].astype(jnp.bfloat16)
    acc_ref[...] += jnp.dot(a, xk_ref[...], preferred_element_type=jnp.float32)

    @pl.when(k == nk - 1)
    def _():
        n = n_ref[...]  # (1,1) int32, broadcasts
        h = (1.0 + eps) * xi_ref[...].astype(jnp.float32) + acc_ref[...]
        # GINConv MLP (mlp_layers=2): Linear -> ReLU -> Linear, bf16 operands,
        # f32 accumulation.
        h = jnp.dot(h.astype(jnp.bfloat16), w1_ref[...],
                    preferred_element_type=jnp.float32) + b1_ref[...]
        h = jnp.maximum(h, 0.0)
        h = jnp.dot(h.astype(jnp.bfloat16), w2_ref[...],
                    preferred_element_type=jnp.float32) + b2_ref[...]
        # activate_func(x, 'relu') applied after the conv
        h = jnp.maximum(h, 0.0)
        # zero padded node rows so BN stats / pooling stay exact
        row = jax.lax.broadcasted_iota(jnp.int32, h.shape, 0) + row_off
        h = jnp.where(row < n, h, 0.0)
        o_ref[...] = h
        # Fused BatchNorm partials for this row tile (replicated over the 8
        # sublanes so the (8, hp) output block is tile-aligned).
        s = jnp.sum(h, axis=0, keepdims=True)
        sq = jnp.sum(h * h, axis=0, keepdims=True)
        psum_ref[...] = jnp.broadcast_to(s, psum_ref.shape)
        psq_ref[...] = jnp.broadcast_to(sq, psq_ref.shape)


def _bn_apply_kernel(n_ref, h_ref, sum_ref, sq_ref, gamma_ref, beta_ref,
                     o_ref, *, tm, bn_eps):
    """BatchNorm1d (training-mode biased batch stats), bf16 output,
    padded node rows re-zeroed."""
    i = pl.program_id(0)
    row_off = i * tm

    n = n_ref[...]                       # (1,1) int32
    nf = n.astype(jnp.float32)
    mean = sum_ref[...] / nf
    var = sq_ref[...] / nf - mean * mean
    inv = jax.lax.rsqrt(var + bn_eps)
    y = gamma_ref[...] * (h_ref[...] - mean) * inv + beta_ref[...]
    row = jax.lax.broadcasted_iota(jnp.int32, y.shape, 0) + row_off
    y = jnp.where(row < n, y, 0.0)
    o_ref[...] = y.astype(o_ref.dtype)


def _gin_head_kernel(p_ref, x_ref, gf_ref, w1x_ref, w1g_ref, b1_ref,
                     w2_ref, b2_ref, o_ref, acc_ref, *, num_class):
    """global_add_pool (tiled over nodes) + fc1 + ReLU + fc2 + log_softmax.

    concat([pooled, gf]) @ W1 is expressed as pooled @ W1x + gf @ W1g.
    """
    k = pl.program_id(0)
    nk = pl.num_programs(0)

    @pl.when(k == 0)
    def _():
        acc_ref[...] = jnp.zeros_like(acc_ref)

    # bf16 0/1 pooling matrix x bf16 node features, f32 accumulate.
    acc_ref[...] += jnp.dot(p_ref[...], x_ref[...],
                            preferred_element_type=jnp.float32)

    @pl.when(k == nk - 1)
    def _():
        pooled = acc_ref[...].astype(jnp.bfloat16)
        h = (jnp.dot(pooled, w1x_ref[...], preferred_element_type=jnp.float32)
             + jnp.dot(gf_ref[...], w1g_ref[...],
                       preferred_element_type=jnp.float32)
             + b1_ref[...])
        h = jnp.maximum(h, 0.0)  # activate_func(x, 'relu')
        # TODO(synk): dropout omitted (inference-mode identity)
        logits = jnp.dot(h.astype(jnp.bfloat16), w2_ref[...],
                         preferred_element_type=jnp.float32) + b2_ref[...]
        # class mask + log_softmax kept in f32
        col = jax.lax.broadcasted_iota(jnp.int32, logits.shape, 1)
        logits = jnp.where(col < num_class, logits, jnp.float32(-1e30))
        m = jnp.max(logits, axis=1, keepdims=True)
        s = logits - m
        lse = jnp.log(jnp.sum(jnp.exp(s), axis=1, keepdims=True))
        o_ref[...] = s - lse


# ------------------------------ JAX wrappers -------------------------------


def gin_conv_layer(nvec, adj_i8, x_bf16, w1, b1, w2, b2, *, eps, tm, tk):
    n_pad = adj_i8.shape[0]
    fp = x_bf16.shape[1]
    hp = w1.shape[1]
    n_row_tiles = n_pad // tm
    grid = (n_row_tiles, n_pad // tk)
    kernel = functools.partial(_gin_conv_kernel, eps=float(eps), tm=int(tm))
    cost = pl.CostEstimate(
        flops=2 * n_pad * n_pad * fp + 2 * n_pad * (fp * hp + hp * hp),
        transcendentals=0,
        bytes_accessed=(n_pad * n_pad                       # int8 A
                        + n_row_tiles * n_pad * fp * 2      # xk re-streamed
                        + n_pad * fp * 2                    # xi
                        + n_pad * hp * 4),                  # f32 out
    )
    return pl.pallas_call(
        kernel,
        out_shape=(jax.ShapeDtypeStruct((n_pad, hp), jnp.float32),
                   jax.ShapeDtypeStruct((8 * n_row_tiles, hp), jnp.float32),
                   jax.ShapeDtypeStruct((8 * n_row_tiles, hp), jnp.float32)),
        grid=grid,
        in_specs=[
            pl.BlockSpec((1, 1), lambda i, k: (0, 0)),      # n_real (int32)
            pl.BlockSpec((tm, tk), lambda i, k: (i, k)),    # A tile (int8)
            pl.BlockSpec((tk, fp), lambda i, k: (k, 0)),    # x contraction tile (bf16)
            pl.BlockSpec((tm, fp), lambda i, k: (i, 0)),    # x row tile (bf16, self term)
            pl.BlockSpec((fp, hp), lambda i, k: (0, 0)),    # W1 (bf16)
            pl.BlockSpec((1, hp), lambda i, k: (0, 0)),     # b1 (f32)
            pl.BlockSpec((hp, hp), lambda i, k: (0, 0)),    # W2 (bf16)
            pl.BlockSpec((1, hp), lambda i, k: (0, 0)),     # b2 (f32)
        ],
        out_specs=(pl.BlockSpec((tm, hp), lambda i, k: (i, 0)),
                   pl.BlockSpec((8, hp), lambda i, k: (i, 0)),
                   pl.BlockSpec((8, hp), lambda i, k: (i, 0))),
        scratch_shapes=[pltpu.VMEM((tm, fp), jnp.float32)],
        compiler_params=pltpu.CompilerParams(
            dimension_semantics=("parallel", "arbitrary"),
            vmem_limit_bytes=VMEM_LIMIT),
        cost_estimate=cost,
    )(nvec, adj_i8, x_bf16, x_bf16, w1, b1, w2, b2)


def bn_apply(nvec, h, ssum, ssq, gamma, beta, *, tm, bn_eps=1e-5):
    n_pad, hp = h.shape
    kernel = functools.partial(_bn_apply_kernel, tm=int(tm),
                               bn_eps=float(bn_eps))
    return pl.pallas_call(
        kernel,
        out_shape=jax.ShapeDtypeStruct((n_pad, hp), jnp.bfloat16),
        grid=(n_pad // tm,),
        in_specs=[pl.BlockSpec((1, 1), lambda i: (0, 0)),
                  pl.BlockSpec((tm, hp), lambda i: (i, 0)),
                  pl.BlockSpec((1, hp), lambda i: (0, 0)),
                  pl.BlockSpec((1, hp), lambda i: (0, 0)),
                  pl.BlockSpec((1, hp), lambda i: (0, 0)),
                  pl.BlockSpec((1, hp), lambda i: (0, 0))],
        out_specs=pl.BlockSpec((tm, hp), lambda i: (i, 0)),
        compiler_params=pltpu.CompilerParams(
            dimension_semantics=("parallel",),
            vmem_limit_bytes=VMEM_LIMIT),
    )(nvec, h, ssum, ssq, gamma, beta)


def gin_head(pool, x, gf, w1x, w1g, b1, w2, b2, *, num_class, tk):
    g_pad, n_pad = pool.shape
    hp = x.shape[1]
    gfp = gf.shape[1]
    h2p = w1x.shape[1]
    cp = w2.shape[1]
    kernel = functools.partial(_gin_head_kernel, num_class=int(num_class))
    # TODO(synk): on v7x the single 'arbitrary' axis runs on one TensorCore;
    #             a 2-way split with per-core partial accumulators would help.
    return pl.pallas_call(
        kernel,
        out_shape=jax.ShapeDtypeStruct((g_pad, cp), jnp.float32),
        grid=(n_pad // tk,),
        in_specs=[pl.BlockSpec((g_pad, tk), lambda k: (0, k)),   # pool tile (bf16)
                  pl.BlockSpec((tk, hp), lambda k: (k, 0)),      # x tile (bf16)
                  pl.BlockSpec((g_pad, gfp), lambda k: (0, 0)),  # graph features (bf16)
                  pl.BlockSpec((hp, h2p), lambda k: (0, 0)),     # fc1 node part (bf16)
                  pl.BlockSpec((gfp, h2p), lambda k: (0, 0)),    # fc1 gf part (bf16)
                  pl.BlockSpec((1, h2p), lambda k: (0, 0)),      # fc1 bias (f32)
                  pl.BlockSpec((h2p, cp), lambda k: (0, 0)),     # fc2 (bf16)
                  pl.BlockSpec((1, cp), lambda k: (0, 0))],      # fc2 bias (f32)
        out_specs=pl.BlockSpec((g_pad, cp), lambda k: (0, 0)),
        scratch_shapes=[pltpu.VMEM((g_pad, hp), jnp.float32)],
        compiler_params=pltpu.CompilerParams(
            dimension_semantics=("arbitrary",),
            vmem_limit_bytes=VMEM_LIMIT),
    )(pool, x, gf, w1x, w1g, b1, w2, b2)


# ------------------------- Parameter construction --------------------------


def _linear_params(key, fan_in, fan_out):
    """PyTorch-style Linear init (uniform in +-1/sqrt(fan_in)), deterministic."""
    kw, kb = jax.random.split(key)
    bound = 1.0 / jnp.sqrt(jnp.float32(fan_in))
    w = jax.random.uniform(kw, (fan_in, fan_out), jnp.float32, -bound, bound)
    b = jax.random.uniform(kb, (1, fan_out), jnp.float32, -bound, bound)
    return w, b


def build_gin_params(key, features_num, hidden, num_class, num_graph_features,
                     num_layers):
    """Shapes follow GIN.__init__ with mlp_layers=2."""
    params = {"convs": [], "bns": []}
    n_keys = 2 * (num_layers - 2) + 2
    keys = jax.random.split(key, n_keys)
    ki = 0
    in_dims = [features_num] + [hidden[i] for i in range(num_layers - 3)]
    out_dims = [hidden[i] for i in range(num_layers - 2)]
    for li in range(num_layers - 2):
        w1, b1 = _linear_params(keys[ki], in_dims[li], out_dims[li]); ki += 1
        w2, b2 = _linear_params(keys[ki], out_dims[li], out_dims[li]); ki += 1
        params["convs"].append((w1, b1, w2, b2))
        params["bns"].append((jnp.ones((1, out_dims[li]), jnp.float32),
                              jnp.zeros((1, out_dims[li]), jnp.float32)))
    fc1_in = hidden[num_layers - 3] + num_graph_features
    fc1_out = hidden[num_layers - 2]
    w_fc1, b_fc1 = _linear_params(keys[ki], fc1_in, fc1_out); ki += 1
    params["fc1_x"] = w_fc1[:hidden[num_layers - 3], :]
    params["fc1_g"] = w_fc1[hidden[num_layers - 3]:, :]
    params["fc1_b"] = b_fc1
    w_fc2, b_fc2 = _linear_params(keys[ki], fc1_out, num_class); ki += 1
    params["fc2_w"] = w_fc2
    params["fc2_b"] = b_fc2
    return params


# --------------------------------- forward ---------------------------------


def gin_forward(params, x, edge_index, batch, graph_feature, *, eps=0.0):
    n_real, f_real = x.shape
    num_graphs = graph_feature.shape[0]
    num_class = params["fc2_w"].shape[1]

    # Tile sizes: larger tiles for larger graphs (better HBM roofline, fewer
    # grid-step overheads); working set stays well inside the 32 MiB scoped
    # VMEM limit on all generations (incl. v7x's 64 MiB/TC physical).
    if n_real <= 256:
        tm, tk = 128, 128
    elif n_real <= 2048:
        tm, tk = 256, 512
    else:
        tm, tk = 512, 1024
    n_pad = _round_up(n_real, max(tm, tk))

    # n_real as data (avoids recompiles across graph sizes).
    nvec = jnp.full((1, 1), n_real, dtype=jnp.int32)

    # Dense adjacency A[dst, src] built directly as int8 (1 byte/element).
    # TODO(synk): hoist out of the forward when the graph is static; use a CSR
    #             gather kernel for very large sparse graphs.
    n_edges = edge_index.shape[1]
    adj_i8 = jnp.zeros((n_pad, n_pad), jnp.int8).at[
        edge_index[1], edge_index[0]].add(jnp.ones((n_edges,), jnp.int8))

    # Pooling matrix P[g, i] = 1 iff node i belongs to graph g (bf16, exact).
    g_pad = _round_up(num_graphs, 8)
    pool = (batch[None, :] == jnp.arange(g_pad)[:, None]).astype(jnp.bfloat16)
    pool = jnp.pad(pool, ((0, 0), (0, n_pad - n_real)))

    # Node features padded to lane width / tile-multiple rows, bf16 stream.
    fp = _round_up(f_real, LANE)
    h_bf = jnp.pad(x, ((0, n_pad - n_real), (0, fp - f_real))).astype(jnp.bfloat16)

    for (w1, b1, w2, b2), (gamma, beta) in zip(params["convs"], params["bns"]):
        in_p = _round_up(w1.shape[0], LANE)
        hid_p = _round_up(w1.shape[1], LANE)
        w1p = _pad2(w1, in_p, hid_p).astype(jnp.bfloat16)
        b1p = _pad2(b1, 1, hid_p)
        w2p = _pad2(w2, hid_p, hid_p).astype(jnp.bfloat16)
        b2p = _pad2(b2, 1, hid_p)
        gp = jnp.pad(gamma, ((0, 0), (0, hid_p - gamma.shape[1])),
                     constant_values=1.0)
        bp = _pad2(beta, 1, hid_p)

        h_f32, psum, psq = gin_conv_layer(nvec, adj_i8, h_bf, w1p, b1p,
                                          w2p, b2p, eps=eps, tm=tm, tk=tk)
        # Tiny cross-row-tile reduction of the fused BN partials (XLA).
        n_tiles = psum.shape[0] // 8
        ssum = jnp.sum(psum.reshape(n_tiles, 8, hid_p)[:, 0, :],
                       axis=0, keepdims=True)
        ssq = jnp.sum(psq.reshape(n_tiles, 8, hid_p)[:, 0, :],
                      axis=0, keepdims=True)
        # BN apply -> bf16 output, padded rows re-zeroed; feeds next conv/head.
        h_bf = bn_apply(nvec, h_f32, ssum, ssq, gp, bp, tm=tm)

    # Head: pooled readout + fc1 + relu + fc2 + log_softmax.
    gf_real = graph_feature.shape[1]
    gfp = _round_up(max(gf_real, 1), LANE)
    gfpad = jnp.pad(graph_feature,
                    ((0, g_pad - num_graphs), (0, gfp - gf_real)))
    gfpad = gfpad.astype(jnp.bfloat16)
    hid_last_p = _round_up(params["fc1_x"].shape[0], LANE)
    h2p = _round_up(params["fc2_w"].shape[0], LANE)
    cp = _round_up(num_class, LANE)
    w1x = _pad2(params["fc1_x"], hid_last_p, h2p).astype(jnp.bfloat16)
    w1g = _pad2(params["fc1_g"], gfp, h2p).astype(jnp.bfloat16)
    fb1 = _pad2(params["fc1_b"], 1, h2p)
    fw2 = _pad2(params["fc2_w"], h2p, cp).astype(jnp.bfloat16)
    fb2 = _pad2(params["fc2_b"], 1, cp)

    out_pad = gin_head(pool, h_bf, gfpad, w1x, w1g, fb1, fw2, fb2,
                       num_class=num_class, tk=tk)
    return out_pad[:num_graphs, :num_class]


# ---------------------------------- main -----------------------------------

if __name__ == "__main__":
    # Config consistent with the module: num_layers=4, hidden=[32,32,32],
    # mlp_layers=2, act='relu', eps='True' (train_eps, init 0), dropout=0.5,
    # num_graph_features=4.
    FEATURES_NUM = 8
    HIDDEN = [32, 32, 32]
    NUM_LAYERS = 4
    NUM_CLASS = 4
    NUM_GRAPH_FEATURES = 4
    NODES_PER_GRAPH = 8
    NUM_GRAPHS = 2
    N = NODES_PER_GRAPH * NUM_GRAPHS

    key = jax.random.PRNGKey(0)
    k_x, k_gf, k_params = jax.random.split(key, 3)

    x = jax.random.normal(k_x, (N, FEATURES_NUM), jnp.float32)
    graph_feature = jax.random.normal(k_gf, (NUM_GRAPHS, NUM_GRAPH_FEATURES),
                                      jnp.float32)
    batch = jnp.repeat(jnp.arange(NUM_GRAPHS, dtype=jnp.int32),
                       NODES_PER_GRAPH)

    # deterministic bidirectional ring graph within each component
    srcs, dsts = [], []
    for g in range(NUM_GRAPHS):
        off = g * NODES_PER_GRAPH
        for i in range(NODES_PER_GRAPH):
            j = (i + 1) % NODES_PER_GRAPH
            srcs += [off + i, off + j]
            dsts += [off + j, off + i]
    edge_index = jnp.array([srcs, dsts], dtype=jnp.int32)  # (2, E)

    params = build_gin_params(k_params, FEATURES_NUM, HIDDEN, NUM_CLASS,
                              NUM_GRAPH_FEATURES, NUM_LAYERS)

    out = gin_forward(params, x, edge_index, batch, graph_feature, eps=0.0)
    out = jax.block_until_ready(out)
    assert out.shape == (NUM_GRAPHS, NUM_CLASS)
    assert bool(jnp.all(jnp.isfinite(out)))
    # log_softmax rows should sum (in prob space) to ~1
    assert jnp.allclose(jnp.sum(jnp.exp(out), axis=1), 1.0, atol=1e-4)
    print("KERNEL_OK")
</pallas_src>

<mosaic_0001>
module attributes {stable_mosaic.version = 11 : i64} {
  func.func @_gin_conv_kernel(%arg0: i32, %arg1: i32, %arg2: memref<1x1xi32, #tpu.memory_space<vmem>>, %arg3: memref<128x128xi8, #tpu.memory_space<vmem>>, %arg4: memref<128x128xbf16, #tpu.memory_space<vmem>>, %arg5: memref<128x128xbf16, #tpu.memory_space<vmem>>, %arg6: memref<128x128xbf16, #tpu.memory_space<vmem>>, %arg7: memref<1x128xf32, #tpu.memory_space<vmem>>, %arg8: memref<128x128xbf16, #tpu.memory_space<vmem>>, %arg9: memref<1x128xf32, #tpu.memory_space<vmem>>, %arg10: memref<128x128xf32, #tpu.memory_space<vmem>>, %arg11: memref<8x128xf32, #tpu.memory_space<vmem>>, %arg12: memref<8x128xf32, #tpu.memory_space<vmem>>, %arg13: memref<128x128xf32, #tpu.memory_space<vmem>>) attributes {dimension_semantics = [#tpu.dimension_semantics<parallel>, #tpu.dimension_semantics<arbitrary>], iteration_bounds = array<i64: 1, 1>, scalar_prefetch = 0 : i64, scratch_operands = 1 : i64, tpu.core_type = #tpu.core_type<tc>, window_params = [{pipeline_mode = #tpu.pipeline_mode<synchronous>, transform_indices = @transform_0, window_bounds = array<i64: 1, 1>}, {transform_indices = @transform_1, window_bounds = array<i64: 128, 128>}, {transform_indices = @transform_2, window_bounds = array<i64: 128, 128>}, {transform_indices = @transform_3, window_bounds = array<i64: 128, 128>}, {pipeline_mode = #tpu.pipeline_mode<synchronous>, transform_indices = @transform_4, window_bounds = array<i64: 128, 128>}, {pipeline_mode = #tpu.pipeline_mode<synchronous>, transform_indices = @transform_5, window_bounds = array<i64: 1, 128>}, {pipeline_mode = #tpu.pipeline_mode<synchronous>, transform_indices = @transform_6, window_bounds = array<i64: 128, 128>}, {pipeline_mode = #tpu.pipeline_mode<synchronous>, transform_indices = @transform_7, window_bounds = array<i64: 1, 128>}, {transform_indices = @transform_8, window_bounds = array<i64: 128, 128>}, {transform_indices = @transform_9, window_bounds = array<i64: 8, 128>}, {transform_indices = @transform_10, window_bounds = array<i64: 8, 128>}]} {
    %c128_i32 = arith.constant 128 : i32
    %0 = arith.muli %arg0, %c128_i32 : i32
    %c0_i32 = arith.constant 0 : i32
    %1 = arith.cmpi eq, %arg1, %c0_i32 : i32
    %2 = arith.extui %1 : i1 to i32
    %c0_i32_0 = arith.constant 0 : i32
    %3 = arith.cmpi ne, %2, %c0_i32_0 : i32
    scf.if %3 {
      %cst_10 = arith.constant 0.000000e+00 : f32
      %14 = vector.broadcast %cst_10 : f32 to vector<128x128xf32>
      %c0_11 = arith.constant 0 : index
      %c0_12 = arith.constant 0 : index
      %15 = vector.load %arg13[%c0_11, %c0_12] : memref<128x128xf32, #tpu.memory_space<vmem>>, vector<128x128xf32>
      tpu.vector_store %arg13[%c0_11, %c0_12], %14 {strides = array<i32>} : memref<128x128xf32, #tpu.memory_space<vmem>>, vector<128x128xf32>,
    } else {
    }
    %c0 = arith.constant 0 : index
    %c0_1 = arith.constant 0 : index
    %4 = vector.load %arg3[%c0, %c0_1] : memref<128x128xi8, #tpu.memory_space<vmem>>, vector<128x128xi8>
    %5 = arith.sitofp %4 : vector<128x128xi8> to vector<128x128xbf16>
    %c0_2 = arith.constant 0 : index
    %c0_3 = arith.constant 0 : index
    %6 = vector.load %arg13[%c0_2, %c0_3] : memref<128x128xf32, #tpu.memory_space<vmem>>, vector<128x128xf32>
    %c0_4 = arith.constant 0 : index
    %c0_5 = arith.constant 0 : index
    %7 = vector.load %arg4[%c0_4, %c0_5] : memref<128x128xbf16, #tpu.memory_space<vmem>>, vector<128x128xbf16>
    %cst = arith.constant dense<0.000000e+00> : vector<128x128xf32>
    %8 = tpu.matmul %5, %7, %cst {dimension_numbers = #tpu.dot_dimension_numbers<[1], [0], [0], [1], [0, 0, 1, 1], [], []>} : vector<128x128xbf16>, vector<128x128xbf16>, vector<128x128xf32> -> vector<128x128xf32>
    %9 = arith.addf %6, %8 : vector<128x128xf32>
    %c0_6 = arith.constant 0 : index
    %c0_7 = arith.constant 0 : index
    %10 = vector.load %arg13[%c0_6, %c0_7] : memref<128x128xf32, #tpu.memory_space<vmem>>, vector<128x128xf32>
    tpu.vector_store %arg13[%c0_6, %c0_7], %9 {strides = array<i32>} : memref<128x128xf32, #tpu.memory_space<vmem>>, vector<128x128xf32>,
    %c0_i32_8 = arith.constant 0 : i32
    %11 = arith.cmpi eq, %arg1, %c0_i32_8 : i32
    %12 = arith.extui %11 : i1 to i32
    %c0_i32_9 = arith.constant 0 : i32
    %13 = arith.cmpi ne, %12, %c0_i32_9 : i32
    scf.if %13 {
      %c0_10 = arith.constant 0 : index
      %c0_11 = arith.constant 0 : index
      %14 = vector.load %arg2[%c0_10, %c0_11] : memref<1x1xi32, #tpu.memory_space<vmem>>, vector<1x1xi32>
      %c0_12 = arith.constant 0 : index
      %c0_13 = arith.constant 0 : index
      %15 = vector.load %arg5[%c0_12, %c0_13] : memref<128x128xbf16, #tpu.memory_space<vmem>>, vector<128x128xbf16>
      %16 = arith.extf %15 : vector<128x128xbf16> to vector<128x128xf32>
      %cst_14 = arith.constant 1.000000e+00 : f32
      %17 = vector.broadcast %cst_14 : f32 to vector<128x128xf32>
      %18 = arith.mulf %17, %16 : vector<128x128xf32>
      %c0_15 = arith.constant 0 : index
      %c0_16 = arith.constant 0 : index
      %19 = vector.load %arg13[%c0_15, %c0_16] : memref<128x128xf32, #tpu.memory_space<vmem>>, vector<128x128xf32>
      %20 = arith.addf %18, %19 : vector<128x128xf32>
      %21 = arith.truncf %20 : vector<128x128xf32> to vector<128x128xbf16>
      %c0_17 = arith.constant 0 : index
      %c0_18 = arith.constant 0 : index
      %22 = vector.load %arg6[%c0_17, %c0_18] : memref<128x128xbf16, #tpu.memory_space<vmem>>, vector<128x128xbf16>
      %cst_19 = arith.constant dense<0.000000e+00> : vector<128x128xf32>
      %23 = tpu.matmul %21, %22, %cst_19 {dimension_numbers = #tpu.dot_dimension_numbers<[1], [0], [0], [1], [0, 0, 1, 1], [], []>} : vector<128x128xbf16>, vector<128x128xbf16>, vector<128x128xf32> -> vector<128x128xf32>
      %c0_20 = arith.constant 0 : index
      %c0_21 = arith.constant 0 : index
      %24 = vector.load %arg7[%c0_20, %c0_21] : memref<1x128xf32, #tpu.memory_space<vmem>>, vector<1x128xf32>
      %25 = vector.broadcast %24 : vector<1x128xf32> to vector<128x128xf32>
      %26 = arith.addf %23, %25 : vector<128x128xf32>
      %cst_22 = arith.constant 0.000000e+00 : f32
      %27 = vector.broadcast %cst_22 : f32 to vector<128x128xf32>
      %28 = arith.maximumf %26, %27 : vector<128x128xf32>
      %29 = arith.truncf %28 : vector<128x128xf32> to vector<128x128xbf16>
      %c0_23 = arith.constant 0 : index
      %c0_24 = arith.constant 0 : index
      %30 = vector.load %arg8[%c0_23, %c0_24] : memref<128x128xbf16, #tpu.memory_space<vmem>>, vector<128x128xbf16>
      %cst_25 = arith.constant dense<0.000000e+00> : vector<128x128xf32>
      %31 = tpu.matmul %29, %30, %cst_25 {dimension_numbers = #tpu.dot_dimension_numbers<[1], [0], [0], [1], [0, 0, 1, 1], [], []>} : vector<128x128xbf16>, vector<128x128xbf16>, vector<128x128xf32> -> vector<128x128xf32>
      %c0_26 = arith.constant 0 : index
      %c0_27 = arith.constant 0 : index
      %32 = vector.load %arg9[%c0_26, %c0_27] : memref<1x128xf32, #tpu.memory_space<vmem>>, vector<1x128xf32>
      %33 = vector.broadcast %32 : vector<1x128xf32> to vector<128x128xf32>
      %34 = arith.addf %31, %33 : vector<128x128xf32>
      %cst_28 = arith.constant 0.000000e+00 : f32
      %35 = vector.broadcast %cst_28 : f32 to vector<128x128xf32>
      %36 = arith.maximumf %34, %35 : vector<128x128xf32>
      %37 = tpu.iota {dimensions = array<i32: 0>} : vector<128x128xi32>
      %38 = vector.broadcast %0 : i32 to vector<128x128xi32>
      %39 = arith.addi %37, %38 : vector<128x128xi32>
      %40 = vector.broadcast %14 : vector<1x1xi32> to vector<128x128xi32>
      %41 = arith.cmpi slt, %39, %40 : vector<128x128xi32>
      %cst_29 = arith.constant 0.000000e+00 : f32
      %42 = vector.broadcast %cst_29 : f32 to vector<128x128xf32>
      %43 = arith.select %41, %36, %42 : vector<128x128xi1>, vector<128x128xf32>
      %c0_30 = arith.constant 0 : index
      %c0_31 = arith.constant 0 : index
      %44 = vector.load %arg10[%c0_30, %c0_31] : memref<128x128xf32, #tpu.memory_space<vmem>>, vector<128x128xf32>
      tpu.vector_store %arg10[%c0_30, %c0_31], %43 {strides = array<i32>} : memref<128x128xf32, #tpu.memory_space<vmem>>, vector<128x128xf32>,
      %cst_32 = arith.constant dense<0.000000e+00> : vector<128xf32>
      %45 = vector.multi_reduction <add>, %43, %cst_32 [0] : vector<128x128xf32> to vector<128xf32>
      %46 = vector.shape_cast %45 : vector<128xf32> to vector<1x128xf32>
      %47 = arith.mulf %43, %43 : vector<128x128xf32>
      %cst_33 = arith.constant dense<0.000000e+00> : vector<128xf32>
      %48 = vector.multi_reduction <add>, %47, %cst_33 [0] : vector<128x128xf32> to vector<128xf32>
      %49 = vector.shape_cast %48 : vector<128xf32> to vector<1x128xf32>
      %50 = vector.shape_cast %46 : vector<1x128xf32> to vector<1x128xf32>
      %51 = vector.broadcast %50 : vector<1x128xf32> to vector<8x128xf32>
      %c0_34 = arith.constant 0 : index
      %c0_35 = arith.constant 0 : index
      %52 = vector.load %arg11[%c0_34, %c0_35] : memref<8x128xf32, #tpu.memory_space<vmem>>, vector<8x128xf32>
      tpu.vector_store %arg11[%c0_34, %c0_35], %51 {strides = array<i32>} : memref<8x128xf32, #tpu.memory_space<vmem>>, vector<8x128xf32>,
      %53 = vector.shape_cast %49 : vector<1x128xf32> to vector<1x128xf32>
      %54 = vector.broadcast %53 : vector<1x128xf32> to vector<8x128xf32>
      %c0_36 = arith.constant 0 : index
      %c0_37 = arith.constant 0 : index
      %55 = vector.load %arg12[%c0_36, %c0_37] : memref<8x128xf32, #tpu.memory_space<vmem>>, vector<8x128xf32>
      tpu.vector_store %arg12[%c0_36, %c0_37], %54 {strides = array<i32>} : memref<8x128xf32, #tpu.memory_space<vmem>>, vector<8x128xf32>,
    } else {
    }
    return
  }
  func.func @transform_0(%arg0: i32, %arg1: i32) -> (i32, i32) {
    %c0_i32 = arith.constant 0 : i32
    %c0_i32_0 = arith.constant 0 : i32
    %c0_i32_1 = arith.constant 0 : i32
    return %c0_i32, %c0_i32_0 : i32, i32
  }
  func.func @transform_1(%arg0: i32, %arg1: i32) -> (i32, i32) {
    %c0_i32 = arith.constant 0 : i32
    return %arg0, %arg1 : i32, i32
  }
  func.func @transform_2(%arg0: i32, %arg1: i32) -> (i32, i32) {
    %c0_i32 = arith.constant 0 : i32
    %c0_i32_0 = arith.constant 0 : i32
    return %arg1, %c0_i32 : i32, i32
  }
  func.func @transform_3(%arg0: i32, %arg1: i32) -> (i32, i32) {
    %c0_i32 = arith.constant 0 : i32
    %c0_i32_0 = arith.constant 0 : i32
    return %arg0, %c0_i32 : i32, i32
  }
  func.func @transform_4(%arg0: i32, %arg1: i32) -> (i32, i32) {
    %c0_i32 = arith.constant 0 : i32
    %c0_i32_0 = arith.constant 0 : i32
    %c0_i32_1 = arith.constant 0 : i32
    return %c0_i32, %c0_i32_0 : i32, i32
  }
  func.func @transform_5(%arg0: i32, %arg1: i32) -> (i32, i32) {
    %c0_i32 = arith.constant 0 : i32
    %c0_i32_0 = arith.constant 0 : i32
    %c0_i32_1 = arith.constant 0 : i32
    return %c0_i32, %c0_i32_0 : i32, i32
  }
  func.func @transform_6(%arg0: i32, %arg1: i32) -> (i32, i32) {
    %c0_i32 = arith.constant 0 : i32
    %c0_i32_0 = arith.constant 0 : i32
    %c0_i32_1 = arith.constant 0 : i32
    return %c0_i32, %c0_i32_0 : i32, i32
  }
  func.func @transform_7(%arg0: i32, %arg1: i32) -> (i32, i32) {
    %c0_i32 = arith.constant 0 : i32
    %c0_i32_0 = arith.constant 0 : i32
    %c0_i32_1 = arith.constant 0 : i32
    return %c0_i32, %c0_i32_0 : i32, i32
  }
  func.func @transform_8(%arg0: i32, %arg1: i32) -> (i32, i32) {
    %c0_i32 = arith.constant 0 : i32
    %c0_i32_0 = arith.constant 0 : i32
    return %arg0, %c0_i32 : i32, i32
  }
  func.func @transform_9(%arg0: i32, %arg1: i32) -> (i32, i32) {
    %c0_i32 = arith.constant 0 : i32
    %c0_i32_0 = arith.constant 0 : i32
    return %arg0, %c0_i32 : i32, i32
  }
  func.func @transform_10(%arg0: i32, %arg1: i32) -> (i32, i32) {
    %c0_i32 = arith.constant 0 : i32
    %c0_i32_0 = arith.constant 0 : i32
    return %arg0, %c0_i32 : i32, i32
  }
}

</mosaic_0001>

<bundles_post_ra>
// kernel: tpu_custom_call.1
= control target key start
LH: loop header
LB: loop body
LE: loop exit
PB: predicated region body
PF: predicated region fallthrough
CT: control target
= control target key end

     0   :  { %s1613_s0 = inlined_call_operand.<no memory space> [shape: s32[1,1], index: 0, kind: input, shape index: {}]   ;;  %s1614_s1 = inlined_call_operand.hbm [shape: s8[128,128], index: 1, kind: input, shape index: {}]   ;;  %s1615_s2 = inlined_call_operand.hbm [shape: bf16[128,128], index: 2, kind: input, shape index: {}]   ;;  %s1616_s3 = inlined_call_operand.hbm [shape: bf16[128,128], index: 3, kind: input, shape index: {}]   ;;  %s1617_s4 = inlined_call_operand.hbm [shape: bf16[128,128], index: 4, kind: input, shape index: {}]   ;;  %s1618_s5 = inlined_call_operand.vmem [shape: f32[1,128], index: 5, kind: input, shape index: {}]   ;;  %s1619_s6 = inlined_call_operand.hbm [shape: bf16[128,128], index: 6, kind: input, shape index: {}]   ;;  %s1620_s7 = inlined_call_operand.vmem [shape: f32[1,128], index: 7, kind: input, shape index: {}]   ;;  %s1621_s8 = inlined_call_operand.hbm [shape: f32[128,128], index: 8, kind: output, shape index: {0}]   ;;  %s1622_s9 = inlined_call_operand.hbm [shape: f32[8,128], index: 9, kind: output, shape index: {1}]   ;;  %s1623_s10 = inlined_call_operand.hbm [shape: f32[8,128], index: 10, kind: output, shape index: {2}]  }
   0x1   :  { %v16_v0 = vstv %s1613_s0 }
   0x2   :  { %17 = vst [vmem:[#allocation3] sm:$0x1] %v16_v0 }
   0x3   :  { %18 = vsyncpa [#allocation5], 0 }
   0x4   :  { %19 = vsyncpa [#allocation8], 0 }
   0x5   :  { %20 = vsyncpa [#allocation11], 0 }
   0x6   :  { %21 = vsyncpa [#allocation6], 0 }
   0x7   :  { %22 = vsyncpa [#allocation15], 0  ;;  %s1428_s15 = smov [#allocation7]  }
   0x8   :  { %s42_s16 = sshll.u32 %s1428_s15, 4  ;;  %s43_s16 = int_to_ptr.vmem [resolvable:$true] %s42_s16 }
   0x9   :  { %s1266_s17 = scalar_lea.vmem %s43_s16, 1024  ;;  %p1271_p1 = scmp.lt.s32.totalorder %s43_s16, %s43_s16 }
   0xa   :  { %p1267_p0 = scmp.ne.s32.totalorder %s43_s16, %s1266_s17  ;;  %p1272_p2 = scmp.lt.s32.totalorder %s1266_s17, %s1266_s17 }
   0xc   :  { %p1273_p3 = por %p1272_p2, %p1271_p1 }
   0xe   :  { %p1274_p4 = pnand %p1273_p3, %p1267_p0 }
  0x10   :  { %1277 = shalt.err (!%p1274_p4)
}
  0x11   :  { %s1429_s18 = smov 64   ;;  %s1430_s19 = smov 4  }
  0x12   :  { %48 = dma.hbm_to_vmem [thread:$0]  %s1615_s2, 1024, %s43_s16, [#allocation8], %s1429_s18, %s1429_s18, %s1430_s19  }
  0x13   :  { %s1431_s21 = smov [#allocation10]   ;;  %s1432_s23 = smov [#allocation4]  }
  0x14   :  { %s66_s22 = sshll.u32 %s1431_s21, 4  ;;  %s30_s24 = sshll.u32 %s1432_s23, 4  ;;  %s67_s22 = int_to_ptr.vmem [resolvable:$true] %s66_s22  ;;  %s31_s24 = int_to_ptr.vmem [resolvable:$true] %s30_s24 }
  0x15   :  { %s1286_s25 = scalar_lea.vmem %s67_s22, 1024  ;;  %p1291_p6 = scmp.lt.s32.totalorder %s67_s22, %s67_s22 }
  0x16   :  { %p1287_p5 = scmp.ne.s32.totalorder %s67_s22, %s1286_s25  ;;  %p1292_p7 = scmp.lt.s32.totalorder %s1286_s25, %s1286_s25 }
  0x18   :  { %p1293_p8 = por %p1292_p7, %p1291_p6 }
  0x1a   :  { %p1294_p9 = pnand %p1293_p8, %p1287_p5 }
  0x1c   :  { %1297 = shalt.err (!%p1294_p9)
}
  0x1d   :  { %72 = dma.hbm_to_vmem [thread:$0]  %s1617_s4, 1024, %s67_s22, [#allocation11], %s1429_s18, %s1429_s18, %s1430_s19  }
  0x1e   :  { %s1306_s2 = scalar_lea.vmem %s31_s24, 512  ;;  %p1311_p11 = scmp.lt.s32.totalorder %s31_s24, %s31_s24 }
  0x1f   :  { %p1307_p10 = scmp.ne.s32.totalorder %s31_s24, %s1306_s2  ;;  %p1312_p12 = scmp.lt.s32.totalorder %s1306_s2, %s1306_s2 }
  0x21   :  { %p1313_p13 = por %p1312_p12, %p1311_p11 }
  0x23   :  { %p1314_p0 = pnand %p1313_p13, %p1307_p10 }
  0x25   :  { %1317 = shalt.err (!%p1314_p0)
}
  0x26   :  { %s1433_s28 = smov 128   ;;  %s1434_s29 = smov 8  }
  0x27   :  { %36 = dma.hbm_to_vmem [thread:$0]  %s1614_s1, 512, %s31_s24, [#allocation5], %s1433_s28, %s1433_s28, %s1434_s29  }
  0x28   :  { %s1435_s12 = smov [#allocation9]   ;;  %s1436_s4 = smov [#allocation12]  }
  0x29   :  { %s54_s13 = sshll.u32 %s1435_s12, 4  ;;  %s80_s14 = sshll.u32 %s1436_s4, 4  ;;  %s55_s13 = int_to_ptr.vmem [resolvable:$true] %s54_s13  ;;  %s81_s14 = int_to_ptr.vmem [resolvable:$true] %s80_s14 }
  0x2a   :  { %s1326_s15 = scalar_lea.vmem %s55_s13, 1024  ;;  %p1331_p2 = scmp.lt.s32.totalorder %s55_s13, %s55_s13 }
  0x2b   :  { %p1327_p1 = scmp.ne.s32.totalorder %s55_s13, %s1326_s15  ;;  %p1332_p3 = scmp.lt.s32.totalorder %s1326_s15, %s1326_s15 }
  0x2d   :  { %p1333_p4 = por %p1332_p3, %p1331_p2 }
  0x2f   :  { %p1334_p5 = pnand %p1333_p4, %p1327_p1 }
  0x31   :  { %1337 = shalt.err (!%p1334_p5)
}
  0x32   :  { %60 = dma.hbm_to_vmem [thread:$0]  %s1616_s3, 1024, %s55_s13, [#allocation8], %s1429_s18, %s1429_s18, %s1430_s19  }
  0x33   :  { %s1346_s1 = scalar_lea.vmem %s81_s14, 1024  ;;  %p1351_p7 = scmp.lt.s32.totalorder %s81_s14, %s81_s14 }
  0x34   :  { %p1347_p6 = scmp.ne.s32.totalorder %s81_s14, %s1346_s1  ;;  %p1352_p8 = scmp.lt.s32.totalorder %s1346_s1, %s1346_s1 }
  0x36   :  { %p1353_p9 = por %p1352_p8, %p1351_p7 }
  0x38   :  { %p1354_p10 = pnand %p1353_p9, %p1347_p6 }
  0x3a   :  { %1357 = shalt.err (!%p1354_p10)
}
  0x3b   :  { %86 = dma.hbm_to_vmem [thread:$0]  %s1619_s6, 1024, %s81_s14, [#allocation11], %s1429_s18, %s1429_s18, %s1430_s19  }
  0x3c   :  { %1418 = dma.done.wait [#allocation5], 512  }
  0x3d   :  { %1419 = vsyncadd [#allocation5], 4294966784 }
  0x3e   :  { %1420 = dma.done.wait [#allocation8], 2048  }
  0x3f   :  { %1421 = vsyncadd [#allocation8], 4294965248 }
  0x40   :  { %1422 = dma.done.wait [#allocation11], 2048  }
  0x41   :  { %1423 = vsyncadd [#allocation11], 4294965248  ;;  %v1234_v1 = vld [vmem:[#allocation7 + $0x38] sm:$0xff]   ;;  %v1235_v2 = vld [vmem:[#allocation7 + $0x30] sm:$0xff]  }
  0x42   :  { %1108 = vmatprep.subr.bf16.mxu0 %v1234_v1  ;;  %v1236_v3 = vld [vmem:[#allocation7 + $0x28] sm:$0xff]   ;;  %v1237_v4 = vld [vmem:[#allocation7 + $0x20] sm:$0xff]   ;;  %v1242_v7 = vld [vmem:[#allocation10 + $0x38] sm:$0xff]  }
  0x43   :  { %1109 = vmatpush3.bf16.msra.mxu0 %v1234_v1  ;;  %v126_v5 = vld [vmem:[#allocation4] sm:$0xff]  ;;  %v1243_v8 = vld [vmem:[#allocation10 + $0x30] sm:$0xff]   ;;  %v1238_v9 = vld [vmem:[#allocation7 + $0x18] sm:$0xff]   ;;  %1140 = vmatprep.subr.bf16.mxu1 %v1242_v7 }
  0x44   :  { %1110 = vmatprep.subr.bf16.mxu0 %v1235_v2  ;;  %v130_v6 = vunpack.c.l.s8.bf16 %v126_v5  ;;  %1141 = vmatpush3.bf16.msra.mxu1 %v1242_v7  ;;  %v1239_v10 = vld [vmem:[#allocation7 + $0x10] sm:$0xff]   ;;  %v1244_v11 = vld [vmem:[#allocation10 + $0x28] sm:$0xff]   ;;  %v1245_v12 = vld [vmem:[#allocation10 + $0x20] sm:$0xff]   ;;  %v131_v17 = vunpack.c.h.s8.bf16 %v126_v5 }
  0x45   :  { %1142 = vmatprep.subr.bf16.mxu1 %v1243_v8  ;;  %v1240_v13 = vld [vmem:[#allocation7 + $0x8] sm:$0xff]   ;;  %v1246_v14 = vld [vmem:[#allocation10 + $0x18] sm:$0xff]   ;;  %v1241_v15 = vld [vmem:[#allocation7] sm:$0xff]  }
  0x46   :  { %1124 = vmatprep.mubr.bf16.mxu0 %v130_v6  ;;  %v127_v16 = vld [vmem:[#allocation4 + $0x8] sm:$0xff]  ;;  %v128_v19 = vld [vmem:[#allocation4 + $0x10] sm:$0xff]  ;;  %v129_v22 = vld [vmem:[#allocation4 + $0x18] sm:$0xff] }
  0x47   :  { %1111 = vmatpush3.bf16.msra.mxu0 %v1235_v2  ;;  %v132_v18 = vunpack.c.l.s8.bf16 %v127_v16  ;;  %v133_v20 = vunpack.c.h.s8.bf16 %v127_v16  ;;  %v134_v21 = vunpack.c.l.s8.bf16 %v128_v19  ;;  %v135_v23 = vunpack.c.h.s8.bf16 %v128_v19  ;;  %v1247_v26 = vld [vmem:[#allocation10 + $0x10] sm:$0xff]   ;;  %v1248_v27 = vld [vmem:[#allocation10 + $0x8] sm:$0xff]   ;;  %v1249_v28 = vld [vmem:[#allocation10] sm:$0xff]  }
  0x48   :  { %1112 = vmatprep.subr.bf16.mxu0 %v1236_v3  ;;  %1143 = vmatpush3.bf16.msra.mxu1 %v1243_v8  ;;  %v136_v24 = vunpack.c.l.s8.bf16 %v129_v22  ;;  %v137_v25 = vunpack.c.h.s8.bf16 %v129_v22  ;;  %v1250_v29 = vld [vmem:[#allocation12 + $0x38] sm:$0xff]   ;;  %v1251_v30 = vld [vmem:[#allocation12 + $0x30] sm:$0xff]   ;;  %v1252_v31 = vld [vmem:[#allocation12 + $0x28] sm:$0xff]  }
  0x49   :  { %1144 = vmatprep.subr.bf16.mxu1 %v1244_v11  ;;  %v1529_v32 = vld [vmem:[#allocation12 + $0x20] sm:$0xff]   ;;  %v1532_v33 = vld [vmem:[#allocation12 + $0x18] sm:$0xff]   ;;  %v1053_v36 = vld [vmem:[#allocation9 + $0x8] sm:$0xff]  }
  0x4a   :  { %v1022_v35 = vld [vmem:[#allocation9] sm:$0xff]   ;;  %v1028_v38 = vunpack.c.h.bf16 %v1053_v36  ;;  %v1027_v41 = vunpack.c.l.bf16 %v1053_v36  ;;  %v1054_v49 = vld [vmem:[#allocation9 + $0x10] sm:$0xff]   ;;  %v1055_v50 = vld [vmem:[#allocation9 + $0x18] sm:$0xff]  }
  0x4b   :  { %1113 = vmatpush3.bf16.msra.mxu0 %v1236_v3  ;;  %v1023_v39 = vunpack.c.l.bf16 %v1022_v35  ;;  %v1024_v40 = vunpack.c.h.bf16 %v1022_v35  ;;  %v1036_v54 = vunpack.c.h.bf16 %v1055_v50  ;;  %v1031_v55 = vunpack.c.l.bf16 %v1054_v49  ;;  %v1056_v1 = vld [vmem:[#allocation9 + $0x20] sm:$0xff]   ;;  %v1057_v3 = vld [vmem:[#allocation9 + $0x28] sm:$0xff]   ;;  %v1059_v19 = vld [vmem:[#allocation9 + $0x38] sm:$0xff]  }
  0x4c   :  { %1114 = vmatprep.subr.bf16.mxu0 %v1237_v4  ;;  %1145 = vmatpush3.bf16.msra.mxu1 %v1244_v11  ;;  %v1032_v56 = vunpack.c.h.bf16 %v1054_v49  ;;  %v1035_v57 = vunpack.c.l.bf16 %v1055_v50  ;;  %v1044_v6 = vunpack.c.h.bf16 %v1057_v3  ;;  %v1039_v7 = vunpack.c.l.bf16 %v1056_v1  ;;  %v1255_v35 = vld [vmem:[#allocation12 + $0x10] sm:$0xff]   ;;  %v1256_v36 = vld [vmem:[#allocation12 + $0x8] sm:$0xff]  }
  0x4d   :  { %1146 = vmatprep.subr.bf16.mxu1 %v1245_v12  ;;  %v1040_v8 = vunpack.c.h.bf16 %v1056_v1  ;;  %v1052_v22 = vunpack.c.h.bf16 %v1059_v19 }
  0x4f   :  { %1115 = vmatpush3.bf16.msra.mxu0 %v1237_v4 }
  0x50   :  { %1116 = vmatprep.subr.bf16.mxu0 %v1238_v9  ;;  %1147 = vmatpush3.bf16.msra.mxu1 %v1245_v12 }
  0x51   :  { %1148 = vmatprep.subr.bf16.mxu1 %v1246_v14 }
  0x53   :  { %1117 = vmatpush3.bf16.msra.mxu0 %v1238_v9  ;;  %v1043_v9 = vunpack.c.l.bf16 %v1057_v3 }
  0x54   :  { %1118 = vmatprep.subr.bf16.mxu0 %v1239_v10  ;;  %1149 = vmatpush3.bf16.msra.mxu1 %v1246_v14 }
  0x55   :  { %1150 = vmatprep.subr.bf16.mxu1 %v1247_v26 }
  0x57   :  { %1119 = vmatpush3.bf16.msra.mxu0 %v1239_v10 }
  0x58   :  { %1120 = vmatprep.subr.bf16.mxu0 %v1240_v13  ;;  %1151 = vmatpush3.bf16.msra.mxu1 %v1247_v26 }
  0x59   :  { %1152 = vmatprep.subr.bf16.mxu1 %v1248_v27 }
  0x5b   :  { %1121 = vmatpush3.bf16.msra.mxu0 %v1240_v13 }
  0x5c   :  { %1122 = vmatprep.subr.bf16.mxu0 %v1241_v15  ;;  %1153 = vmatpush3.bf16.msra.mxu1 %v1248_v27 }
  0x5d   :  { %1154 = vmatprep.subr.bf16.mxu1 %v1249_v28 }
  0x5f   :  { %1123 = vmatpush3.bf16.msra.mxu0 %v1241_v15 }
  0x60   :  { %1155 = vmatpush3.bf16.msra.mxu1 %v1249_v28  ;;  %1172 = vmatprep.subr.bf16.mxu0 %v1250_v29 }
  0x61   :  { %1204 = vmatprep.subr.bf16.mxu1 %v1250_v29 }
  0x62   :  { %1125 = vmatmul.mubr.bf16.vlgmr.msra.gmra.mxu0 %v131_v17  ;;  %v1058_v17 = vld [vmem:[#allocation9 + $0x30] sm:$0xff]  }
  0x63   :  { %1128 = vmatprep.mubr.bf16.mxu0 %v132_v18  ;;  %1173 = vmatpush3.bf16.msra.mxu0 %v1250_v29 }
  0x64   :  { %1174 = vmatprep.subr.bf16.mxu0 %v1251_v30 }
  0x67   :  { %1175 = vmatpush3.bf16.msra.mxu0 %v1251_v30 }
  0x68   :  { %1176 = vmatprep.subr.bf16.mxu0 %v1252_v31 }
  0x6a   :  { %1129 = vmatmul.mubr.bf16.gmra.mxu0 %v133_v20 }
  0x6b   :  { %1132 = vmatprep.mubr.bf16.mxu0 %v134_v21  ;;  %1177 = vmatpush3.bf16.msra.mxu0 %v1252_v31 }
  0x6c   :  { %1178 = vmatprep.subr.bf16.mxu0 %v1529_v32 }
  0x6f   :  { %1179 = vmatpush3.bf16.msra.mxu0 %v1529_v32 }
  0x70   :  { %1180 = vmatprep.subr.bf16.mxu0 %v1532_v33 }
  0x72   :  { %1133 = vmatmul.mubr.bf16.gmra.mxu0 %v135_v23  ;;  %v1047_v23 = vunpack.c.l.bf16 %v1058_v17 }
  0x73   :  { %1136 = vmatprep.mubr.bf16.mxu0 %v136_v24  ;;  %1181 = vmatpush3.bf16.msra.mxu0 %v1532_v33  ;;  %v1048_v24 = vunpack.c.h.bf16 %v1058_v17 }
  0x74   :  { %1182 = vmatprep.subr.bf16.mxu0 %v1255_v35 }
  0x77   :  { %1183 = vmatpush3.bf16.msra.mxu0 %v1255_v35 }
  0x78   :  { %1184 = vmatprep.subr.bf16.mxu0 %v1256_v36 }
  0x7a   :  { %1137 = vmatmul.mubr.bf16.gmra.mxu0 %v137_v25  ;;  %v1051_v25 = vunpack.c.l.bf16 %v1059_v19 }
  0x7b   :  { %1185 = vmatpush3.bf16.msra.mxu0 %v1256_v36 }
 0x122   :  { %v1126_v34 = vpop.f32.mrf.mxu0 }
 0x123   :  { %v401_v47 = vadd.f32 %v1126_v34, %v1027_v41  ;;  %v1002_v41 = vld [vmem:[%s1618_s5] ss:$0 sm:$0xff] }
 0x124   :  { %v252_v37 = vpop.f32.mrf.mxu0 }
 0x125   :  { %v399_v45 = vadd.f32 %v1023_v39, %v252_v37  ;;  %v1020_v37 = vld [vmem:[#allocation3] ss:$0 sm:$0xff] }
 0x126   :  { %v1127_v42 = vpop.f32.mrf.mxu0 }
 0x127   :  { %v402_v43 = vadd.f32 %v1127_v42, %v1028_v38  ;;  %v1437_v38 = vmov 0  }
 0x128   :  { %v255_v44 = vpop.f32.mrf.mxu0  ;;  %1233 = vset.pattern.permute.xlu0 %v1437_v38 }
 0x129   :  { %v400_v46 = vadd.f32 %v1024_v40, %v255_v44  ;;  %v416_v52 = vpack.c.bf16 %v402_v43, %v401_v47  ;;  %838 = vperm.xlu0 %1233, %v1020_v37  }
 0x12a   :  { %v1130_v48 = vpop.f32.mrf.mxu0 }
 0x12b   :  { %v415_v51 = vpack.c.bf16 %v400_v46, %v399_v45  ;;  %v405_v63 = vadd.f32 %v1130_v48, %v1035_v57 }
 0x12c   :  { %v268_v53 = vpop.f32.mrf.mxu0 }
 0x12d   :  { %1156 = vmatprep.mubr.bf16.mxu1 %v415_v51  ;;  %v403_v61 = vadd.f32 %v1031_v55, %v268_v53 }
 0x12e   :  { %v1131_v58 = vpop.f32.mrf.mxu0  ;;  %1157 = vmatmul.mubr.bf16.vlgmr.msra.gmra.mxu1 %v416_v52 }
 0x12f   :  { %1212 = vmatpush3.bf16.msra.mxu1 %v1250_v29  ;;  %v406_v59 = vadd.f32 %v1131_v58, %v1036_v54 }
 0x130   :  { %v271_v60 = vpop.f32.mrf.mxu0  ;;  %1205 = vmatprep.subr.bf16.mxu1 %v1251_v30 }
 0x131   :  { %v404_v62 = vadd.f32 %v1032_v56, %v271_v60  ;;  %v418_v4 = vpack.c.bf16 %v406_v59, %v405_v63 }
 0x132   :  { %v1134_v0 = vpop.f32.mrf.mxu0 }
 0x133   :  { %v417_v2 = vpack.c.bf16 %v404_v62, %v403_v61  ;;  %1213 = vmatpush3.bf16.msra.mxu1 %v1251_v30  ;;  %v409_v15 = vadd.f32 %v1134_v0, %v1043_v9 }
 0x134   :  { %v284_v5 = vpop.f32.mrf.mxu0  ;;  %1206 = vmatprep.subr.bf16.mxu1 %v1252_v31 }
 0x135   :  { %1160 = vmatprep.mubr.bf16.mxu1 %v417_v2  ;;  %v407_v13 = vadd.f32 %v1039_v7, %v284_v5 }
 0x136   :  { %v1135_v10 = vpop.f32.mrf.mxu0  ;;  %1161 = vmatmul.mubr.bf16.gmra.mxu1 %v418_v4 }
 0x137   :  { %1214 = vmatpush3.bf16.msra.mxu1 %v1252_v31  ;;  %v410_v11 = vadd.f32 %v1135_v10, %v1044_v6 }
 0x138   :  { %v287_v12 = vpop.f32.mrf.mxu0  ;;  %1207 = vmatprep.subr.bf16.mxu1 %v1529_v32 }
 0x139   :  { %v408_v14 = vadd.f32 %v1040_v8, %v287_v12  ;;  %v420_v20 = vpack.c.bf16 %v410_v11, %v409_v15 }
 0x13a   :  { %v1138_v16 = vpop.f32.mrf.mxu0 }
 0x13b   :  { %v419_v18 = vpack.c.bf16 %v408_v14, %v407_v13  ;;  %1215 = vmatpush3.bf16.msra.mxu1 %v1529_v32  ;;  %v413_v31 = vadd.f32 %v1138_v16, %v1051_v25 }
 0x13c   :  { %v300_v21 = vpop.f32.mrf.mxu0  ;;  %1208 = vmatprep.subr.bf16.mxu1 %v1532_v33 }
 0x13d   :  { %1164 = vmatprep.mubr.bf16.mxu1 %v419_v18  ;;  %v411_v29 = vadd.f32 %v1047_v23, %v300_v21 }
 0x13e   :  { %v1139_v26 = vpop.f32.mrf.mxu0  ;;  %1165 = vmatmul.mubr.bf16.gmra.mxu1 %v420_v20 }
 0x13f   :  { %1216 = vmatpush3.bf16.msra.mxu1 %v1532_v33  ;;  %v414_v27 = vadd.f32 %v1139_v26, %v1052_v22  ;;  %v1257_v33 = vld [vmem:[#allocation12] sm:$0xff]  }
 0x140   :  { %v303_v28 = vpop.f32.mrf.mxu0  ;;  %1209 = vmatprep.subr.bf16.mxu1 %v1255_v35  ;;  %1186 = vmatprep.subr.bf16.mxu0 %v1257_v33 }
 0x141   :  { %v412_v30 = vadd.f32 %v1048_v24, %v303_v28  ;;  %v422_v32 = vpack.c.bf16 %v414_v27, %v413_v31  ;;  %1187 = vmatpush3.bf16.msra.mxu0 %v1257_v33 }
 0x143   :  { %v421_v34 = vpack.c.bf16 %v412_v30, %v411_v29  ;;  %1217 = vmatpush3.bf16.msra.mxu1 %v1255_v35  ;;  %v1549_v35 = vld [vmem:[%s1620_s7] ss:$0 sm:$0xff]  ;;  %s1438_s7 = smov [#allocation13]  }
 0x144   :  { %1210 = vmatprep.subr.bf16.mxu1 %v1256_v36  ;;  %s953_s19 = sshll.u32 %s1438_s7, 4  ;;  %s954_s19 = int_to_ptr.vmem [resolvable:$true] %s953_s19 }
 0x145   :  { %1168 = vmatprep.mubr.bf16.mxu1 %v421_v34  ;;  %v799_v34 = vlaneseq  ;;  %s1358_s21 = scalar_lea.vmem %s954_s19, 2048  ;;  %p1363_p12 = scmp.lt.s32.totalorder %s954_s19, %s954_s19 }
 0x146   :  { %1169 = vmatmul.mubr.bf16.gmra.mxu1 %v422_v32  ;;  %p1359_p11 = scmp.ne.s32.totalorder %s954_s19, %s1358_s21  ;;  %p1364_p13 = scmp.lt.s32.totalorder %s1358_s21, %s1358_s21 }
 0x147   :  { %1218 = vmatpush3.bf16.msra.mxu1 %v1256_v36  ;;  %v1544_v32 = vshrl.u32 %v799_v34, 7 }
 0x148   :  { %1211 = vmatprep.subr.bf16.mxu1 %v1257_v33  ;;  %p1365_p0 = por %p1364_p13, %p1363_p12 }
 0x149   :  { %v802_v36 = vadd.s32 16, %v1544_v32 }
 0x14a   :  { %p1366_p1 = pnand %p1365_p0, %p1359_p11 }
 0x14b   :  { %1219 = vmatpush3.bf16.msra.mxu1 %v1257_v33 }
 0x1a4   :  { %v1552_v33 = vpop.permute.xlu0 %838 }
 0x1a5   :  { %vm842_vm0 = vcmp.lt.s32.totalorder %v802_v36, %v1552_v33  ;;  %vm840_vm1 = vcmp.lt.s32.totalorder %v1544_v32, %v1552_v33 }
 0x1ee   :  { %v1158_v39 = vpop.f32.mrf.mxu1 }
 0x1ef   :  { %v537_v45 = vadd.f32 %v1158_v39, %v1002_v41 }
 0x1f0   :  { %v528_v40 = vpop.f32.mrf.mxu1 }
 0x1f1   :  { %v529_v43 = vadd.f32 %v1002_v41, %v528_v40  ;;  %v593_v52 = vmax.f32 %v537_v45, 0.0  ;;  %v803_v40 = vadd.s32 24, %v1544_v32 }
 0x1f2   :  { %v1159_v42 = vpop.f32.mrf.mxu1 }
 0x1f3   :  { %v540_v44 = vadd.f32 %v1159_v42, %v1002_v41  ;;  %v591_v50 = vmax.f32 %v529_v43, 0.0  ;;  %vm843_vm2 = vcmp.lt.s32.totalorder %v803_v40, %v1552_v33 }
 0x1f4   :  { %v531_v46 = vpop.f32.mrf.mxu1 }
 0x1f5   :  { %v532_v47 = vadd.f32 %v1002_v41, %v531_v46  ;;  %v594_v48 = vmax.f32 %v540_v44, 0.0  ;;  %v801_v44 = vadd.s32 8, %v1544_v32 }
 0x1f6   :  { %v1162_v49 = vpop.f32.mrf.mxu1 }
 0x1f7   :  { %v592_v51 = vmax.f32 %v532_v47, 0.0  ;;  %v608_v55 = vpack.c.bf16 %v594_v48, %v593_v52  ;;  %v553_v59 = vadd.f32 %v1162_v49, %v1002_v41  ;;  %vm841_vm3 = vcmp.lt.s32.totalorder %v801_v44, %v1552_v33 }
 0x1f8   :  { %v544_v53 = vpop.f32.mrf.mxu1 }
 0x1f9   :  { %v607_v54 = vpack.c.bf16 %v592_v51, %v591_v50  ;;  %v545_v57 = vadd.f32 %v1002_v41, %v544_v53  ;;  %v597_v2 = vmax.f32 %v553_v59, 0.0  ;;  %v806_v53 = vadd.s32 48, %v1544_v32 }
 0x1fa   :  { %v1163_v56 = vpop.f32.mrf.mxu1 }
 0x1fb   :  { %v556_v58 = vadd.f32 %v1163_v56, %v1002_v41  ;;  %1188 = vmatprep.mubr.bf16.mxu0 %v607_v54  ;;  %v595_v0 = vmax.f32 %v545_v57, 0.0  ;;  %vm846_vm4 = vcmp.lt.s32.totalorder %v806_v53, %v1552_v33  ;;  %v814_v53 = vadd.s32 112, %v1544_v32 }
 0x1fc   :  { %v547_v60 = vpop.f32.mrf.mxu1  ;;  %1189 = vmatmul.mubr.bf16.vlgmr.msra.gmra.mxu0 %v608_v55 }
 0x1fd   :  { %v548_v61 = vadd.f32 %v1002_v41, %v547_v60  ;;  %v598_v62 = vmax.f32 %v556_v58, 0.0  ;;  %v804_v58 = vadd.s32 32, %v1544_v32  ;;  %vm854_vm12 = vcmp.lt.s32.totalorder %v814_v53, %v1552_v33 }
 0x1fe   :  { %v1166_v63 = vpop.f32.mrf.mxu1 }
 0x1ff   :  { %v596_v1 = vmax.f32 %v548_v61, 0.0  ;;  %v610_v5 = vpack.c.bf16 %v598_v62, %v597_v2  ;;  %v569_v9 = vadd.f32 %v1166_v63, %v1002_v41  ;;  %v807_v62 = vadd.s32 56, %v1544_v32 }
 0x200   :  { %v560_v3 = vpop.f32.mrf.mxu1  ;;  %vm844_vm5 = vcmp.lt.s32.totalorder %v804_v58, %v1552_v33 }
 0x201   :  { %v609_v4 = vpack.c.bf16 %v596_v1, %v595_v0  ;;  %v561_v7 = vadd.f32 %v1002_v41, %v560_v3  ;;  %v601_v16 = vmax.f32 %v569_v9, 0.0  ;;  %vm847_vm6 = vcmp.lt.s32.totalorder %v807_v62, %v1552_v33 }
 0x202   :  { %v1167_v6 = vpop.f32.mrf.mxu1 }
 0x203   :  { %v572_v8 = vadd.f32 %v1167_v6, %v1002_v41  ;;  %1192 = vmatprep.mubr.bf16.mxu0 %v609_v4  ;;  %v599_v14 = vmax.f32 %v561_v7, 0.0  ;;  %v805_v6 = vadd.s32 40, %v1544_v32 }
 0x204   :  { %v563_v10 = vpop.f32.mrf.mxu1  ;;  %1193 = vmatmul.mubr.bf16.gmra.mxu0 %v610_v5 }
 0x205   :  { %v564_v11 = vadd.f32 %v1002_v41, %v563_v10  ;;  %v602_v12 = vmax.f32 %v572_v8, 0.0  ;;  %vm845_vm7 = vcmp.lt.s32.totalorder %v805_v6, %v1552_v33 }
 0x206   :  { %v1170_v13 = vpop.f32.mrf.mxu1 }
 0x207   :  { %v600_v15 = vmax.f32 %v564_v11, 0.0  ;;  %v612_v19 = vpack.c.bf16 %v602_v12, %v601_v16  ;;  %v585_v23 = vadd.f32 %v1170_v13, %v1002_v41 }
 0x208   :  { %v576_v17 = vpop.f32.mrf.mxu1 }
 0x209   :  { %v611_v18 = vpack.c.bf16 %v600_v15, %v599_v14  ;;  %v577_v21 = vadd.f32 %v1002_v41, %v576_v17  ;;  %v605_v29 = vmax.f32 %v585_v23, 0.0  ;;  %v810_v14 = vadd.s32 80, %v1544_v32 }
 0x20a   :  { %v1171_v20 = vpop.f32.mrf.mxu1 }
 0x20b   :  { %v588_v22 = vadd.f32 %v1171_v20, %v1002_v41  ;;  %1196 = vmatprep.mubr.bf16.mxu1 %v611_v18  ;;  %v603_v27 = vmax.f32 %v577_v21, 0.0  ;;  %vm850_vm8 = vcmp.lt.s32.totalorder %v810_v14, %v1552_v33 }
 0x20c   :  { %v579_v24 = vpop.f32.mrf.mxu1  ;;  %1197 = vmatmul.mubr.bf16.vlgmr.msra.gmra.mxu1 %v612_v19 }
 0x20d   :  { %v580_v25 = vadd.f32 %v1002_v41, %v579_v24  ;;  %v606_v26 = vmax.f32 %v588_v22, 0.0  ;;  %v808_v22 = vadd.s32 64, %v1544_v32 }
 0x20f   :  { %v604_v28 = vmax.f32 %v580_v25, 0.0  ;;  %v614_v31 = vpack.c.bf16 %v606_v26, %v605_v29  ;;  %vm848_vm9 = vcmp.lt.s32.totalorder %v808_v22, %v1552_v33 }
 0x211   :  { %v613_v30 = vpack.c.bf16 %v604_v28, %v603_v27 }
 0x213   :  { %1200 = vmatprep.mubr.bf16.mxu1 %v613_v30  ;;  %v811_v30 = vadd.s32 88, %v1544_v32 }
 0x214   :  { %1201 = vmatmul.mubr.bf16.gmra.mxu1 %v614_v31 }
 0x215   :  { %vm851_vm10 = vcmp.lt.s32.totalorder %v811_v30, %v1552_v33 }
 0x2bc   :  { %v1190_v37 = vpop.f32.mrf.mxu0 }
 0x2bd   :  { %v729_v38 = vadd.f32 %v1190_v37, %v1549_v35 }
 0x2be   :  { %v720_v39 = vpop.f32.mrf.mxu0 }
 0x2bf   :  { %v785_v41 = vmax.f32 %v729_v38, 0.0  ;;  %v721_v42 = vadd.f32 %v1549_v35, %v720_v39 }
 0x2c0   :  { %v1191_v43 = vpop.f32.mrf.mxu0 }
 0x2c1   :  { %v783_v45 = vmax.f32 %v721_v42, 0.0  ;;  %v732_v46 = vadd.f32 %v1191_v43, %v1549_v35  ;;  %v858_v47 = vsel %vm842_vm0, %v785_v41, 0.0 }
 0x2c2   :  { %v723_v48 = vpop.f32.mrf.mxu0  ;;  %874 = vst [vmem:[#allocation13 + $0x10] sm:$0xff] %v858_v47  ;;  %v911_v8 = vmul.f32 %v858_v47, %v858_v47 }
 0x2c3   :  { %v786_v49 = vmax.f32 %v732_v46, 0.0  ;;  %v724_v50 = vadd.f32 %v1549_v35, %v723_v48  ;;  %v856_v51 = vsel %vm840_vm1, %v783_v45, 0.0  ;;  %v809_v45 = vadd.s32 72, %v1544_v32 }
 0x2c4   :  { %872 = vst [vmem:[#allocation13] sm:$0xff] %v856_v51  ;;  %v1194_v52 = vpop.f32.mrf.mxu0  ;;  %v909_v0 = vmul.f32 %v856_v51, %v856_v51 }
 0x2c5   :  { %v859_v54 = vsel %vm843_vm2, %v786_v49, 0.0  ;;  %v784_v55 = vmax.f32 %v724_v50, 0.0  ;;  %v745_v56 = vadd.f32 %v1194_v52, %v1549_v35  ;;  %vm849_vm11 = vcmp.lt.s32.totalorder %v809_v45, %v1552_v33 }
 0x2c6   :  { %875 = vst [vmem:[#allocation13 + $0x18] sm:$0xff] %v859_v54  ;;  %v736_v57 = vpop.f32.mrf.mxu0  ;;  %v912_v15 = vmul.f32 %v859_v54, %v859_v54 }
 0x2c7   :  { %v857_v59 = vsel %vm841_vm3, %v784_v55, 0.0  ;;  %v789_v60 = vmax.f32 %v745_v56, 0.0  ;;  %v737_v61 = vadd.f32 %v1549_v35, %v736_v57  ;;  %v812_v57 = vadd.s32 96, %v1544_v32 }
 0x2c8   :  { %873 = vst [vmem:[#allocation13 + $0x8] sm:$0xff] %v857_v59  ;;  %v888_v63 = vadd.f32 %v857_v59, %v856_v51  ;;  %v910_v1 = vmul.f32 %v857_v59, %v857_v59  ;;  %v1195_v2 = vpop.f32.mrf.mxu0 }
 0x2c9   :  { %v862_v3 = vsel %vm846_vm4, %v789_v60, 0.0  ;;  %v787_v4 = vmax.f32 %v737_v61, 0.0  ;;  %v748_v5 = vadd.f32 %v1195_v2, %v1549_v35  ;;  %vm852_vm13 = vcmp.lt.s32.totalorder %v812_v57, %v1552_v33 }
 0x2ca   :  { %v889_v7 = vadd.f32 %v888_v63, %v858_v47  ;;  %v925_v9 = vadd.f32 %v910_v1, %v909_v0  ;;  %878 = vst [vmem:[#allocation13 + $0x30] sm:$0xff] %v862_v3  ;;  %v739_v10 = vpop.f32.mrf.mxu0  ;;  %v915_v41 = vmul.f32 %v862_v3, %v862_v3  ;;  %v815_v1 = vadd.s32 120, %v1544_v32 }
 0x2cb   :  { %v860_v11 = vsel %vm844_vm5, %v787_v4, 0.0  ;;  %v790_v12 = vmax.f32 %v748_v5, 0.0  ;;  %v740_v13 = vadd.f32 %v1549_v35, %v739_v10 }
 0x2cc   :  { %v926_v16 = vadd.f32 %v925_v9, %v911_v8  ;;  %876 = vst [vmem:[#allocation13 + $0x20] sm:$0xff] %v860_v11  ;;  %v890_v17 = vadd.f32 %v889_v7, %v859_v54  ;;  %v1198_v18 = vpop.f32.mrf.mxu1  ;;  %v913_v24 = vmul.f32 %v860_v11, %v860_v11  ;;  %v813_v9 = vadd.s32 104, %v1544_v32 }
 0x2cd   :  { %v863_v19 = vsel %vm847_vm6, %v790_v12, 0.0  ;;  %v788_v20 = vmax.f32 %v740_v13, 0.0  ;;  %v761_v21 = vadd.f32 %v1198_v18, %v1549_v35  ;;  %vm855_vm14 = vcmp.lt.s32.totalorder %v815_v1, %v1552_v33 }
 0x2ce   :  { %v891_v23 = vadd.f32 %v890_v17, %v860_v11  ;;  %v927_v25 = vadd.f32 %v926_v16, %v912_v15  ;;  %879 = vst [vmem:[#allocation13 + $0x38] sm:$0xff] %v863_v19  ;;  %v752_v26 = vpop.f32.mrf.mxu1  ;;  %v916_v49 = vmul.f32 %v863_v19, %v863_v19  ;;  %vm853_vm15 = vcmp.lt.s32.totalorder %v813_v9, %v1552_v33 }
 0x2cf   :  { %v861_v27 = vsel %vm845_vm7, %v788_v20, 0.0  ;;  %v793_v28 = vmax.f32 %v761_v21, 0.0  ;;  %v753_v29 = vadd.f32 %v1549_v35, %v752_v26 }
 0x2d0   :  { %v928_v31 = vadd.f32 %v927_v25, %v913_v24  ;;  %877 = vst [vmem:[#allocation13 + $0x28] sm:$0xff] %v861_v27  ;;  %v892_v34 = vadd.f32 %v891_v23, %v861_v27  ;;  %v914_v36 = vmul.f32 %v861_v27, %v861_v27  ;;  %v1199_v37 = vpop.f32.mrf.mxu1 }
 0x2d1   :  { %v866_v38 = vsel %vm850_vm8, %v793_v28, 0.0  ;;  %v791_v39 = vmax.f32 %v753_v29, 0.0  ;;  %v764_v40 = vadd.f32 %v1199_v37, %v1549_v35 }
 0x2d2   :  { %v893_v42 = vadd.f32 %v892_v34, %v862_v3  ;;  %v929_v43 = vadd.f32 %v928_v31, %v914_v36  ;;  %882 = vst [vmem:[#allocation13 + $0x50] sm:$0xff] %v866_v38  ;;  %v755_v44 = vpop.f32.mrf.mxu1  ;;  %v919_v10 = vmul.f32 %v866_v38, %v866_v38 }
 0x2d3   :  { %v864_v46 = vsel %vm848_vm9, %v791_v39, 0.0  ;;  %v794_v47 = vmax.f32 %v764_v40, 0.0  ;;  %v756_v48 = vadd.f32 %v1549_v35, %v755_v44 }
 0x2d4   :  { %v930_v50 = vadd.f32 %v929_v43, %v915_v41  ;;  %880 = vst [vmem:[#allocation13 + $0x40] sm:$0xff] %v864_v46  ;;  %v894_v51 = vadd.f32 %v893_v42, %v863_v19  ;;  %v1202_v52 = vpop.f32.mrf.mxu1  ;;  %v917_v59 = vmul.f32 %v864_v46, %v864_v46 }
 0x2d5   :  { %v867_v54 = vsel %vm851_vm10, %v794_v47, 0.0  ;;  %v792_v55 = vmax.f32 %v756_v48, 0.0  ;;  %v777_v56 = vadd.f32 %v1202_v52, %v1549_v35 }
 0x2d6   :  { %v895_v58 = vadd.f32 %v894_v51, %v864_v46  ;;  %v931_v60 = vadd.f32 %v930_v50, %v916_v49  ;;  %883 = vst [vmem:[#allocation13 + $0x58] sm:$0xff] %v867_v54  ;;  %v768_v61 = vpop.f32.mrf.mxu1  ;;  %v920_v17 = vmul.f32 %v867_v54, %v867_v54 }
 0x2d7   :  { %v865_v62 = vsel %vm849_vm11, %v792_v55, 0.0  ;;  %v797_v63 = vmax.f32 %v777_v56, 0.0  ;;  %v769_v0 = vadd.f32 %v1549_v35, %v768_v61 }
 0x2d8   :  { %v932_v2 = vadd.f32 %v931_v60, %v917_v59  ;;  %881 = vst [vmem:[#allocation13 + $0x48] sm:$0xff] %v865_v62  ;;  %v896_v3 = vadd.f32 %v895_v58, %v865_v62  ;;  %v918_v4 = vmul.f32 %v865_v62, %v865_v62  ;;  %v1203_v5 = vpop.f32.mrf.mxu1 }
 0x2d9   :  { %v870_v6 = vsel %vm854_vm12, %v797_v63, 0.0  ;;  %v795_v7 = vmax.f32 %v769_v0, 0.0  ;;  %v780_v8 = vadd.f32 %v1203_v5, %v1549_v35 }
 0x2da   :  { %v897_v11 = vadd.f32 %v896_v3, %v866_v38  ;;  %v933_v12 = vadd.f32 %v932_v2, %v918_v4  ;;  %886 = vst [vmem:[#allocation13 + $0x70] sm:$0xff] %v870_v6  ;;  %v771_v13 = vpop.f32.mrf.mxu1 }
 0x2db   :  { %v868_v14 = vsel %vm852_vm13, %v795_v7, 0.0  ;;  %v798_v15 = vmax.f32 %v780_v8, 0.0  ;;  %v772_v16 = vadd.f32 %v1549_v35, %v771_v13 }
 0x2dc   :  { %v934_v18 = vadd.f32 %v933_v12, %v919_v10  ;;  %884 = vst [vmem:[#allocation13 + $0x60] sm:$0xff] %v868_v14  ;;  %v898_v19 = vadd.f32 %v897_v11, %v867_v54  ;;  %v921_v22 = vmul.f32 %v868_v14, %v868_v14 }
 0x2dd   :  { %v871_v32 = vsel %vm855_vm14, %v798_v15, 0.0  ;;  %v796_v20 = vmax.f32 %v772_v16, 0.0 }
 0x2de   :  { %v899_v21 = vadd.f32 %v898_v19, %v868_v14  ;;  %v935_v23 = vadd.f32 %v934_v18, %v920_v17  ;;  %887 = vst [vmem:[#allocation13 + $0x78] sm:$0xff] %v871_v32 }
 0x2df   :  { %v869_v24 = vsel %vm853_vm15, %v796_v20, 0.0 }
 0x2e0   :  { %v936_v25 = vadd.f32 %v935_v23, %v921_v22  ;;  %885 = vst [vmem:[#allocation13 + $0x68] sm:$0xff] %v869_v24  ;;  %v900_v35 = vadd.f32 %v899_v21, %v869_v24  ;;  %v922_v26 = vmul.f32 %v869_v24, %v869_v24 }
 0x2e1   :  { %1369 = shalt.err (!%p1366_p1)
}
 0x2e2   :  { %959 = dma.vmem_to_hbm [thread:$0]  %s954_s19, 2048, %s1621_s8, [#allocation6], %s1433_s28, %s1433_s28, %s1434_s29   ;;  %v923_v33 = vmul.f32 %v870_v6, %v870_v6  ;;  %v901_v27 = vadd.f32 %v900_v35, %v870_v6  ;;  %v937_v28 = vadd.f32 %v936_v25, %v922_v26  ;;  %v924_v29 = vmul.f32 %v871_v32, %v871_v32 }
 0x2e3   :  { %s1439_s24 = smov [#allocation14]   ;;  %s1440_s26 = smov [#allocation16]  }
 0x2e4   :  { %v902_v30 = vadd.f32 %v901_v27, %v871_v32  ;;  %v938_v31 = vadd.f32 %v937_v28, %v923_v33  ;;  %s966_s25 = sshll.u32 %s1439_s24, 4  ;;  %s976_s8 = sshll.u32 %s1440_s26, 4  ;;  %s967_s25 = int_to_ptr.vmem [resolvable:$true] %s966_s25  ;;  %s977_s8 = int_to_ptr.vmem [resolvable:$true] %s976_s8 }
 0x2e5   :  { %s1378_s27 = scalar_lea.vmem %s967_s25, 128  ;;  %p1383_p3 = scmp.lt.s32.totalorder %s967_s25, %s967_s25 }
 0x2e6   :  { %v939_v34 = vadd.f32 %v938_v31, %v924_v29  ;;  %v903_v36 = vrot.slane %v902_v30, 4  ;;  %p1379_p2 = scmp.ne.s32.totalorder %s967_s25, %s1378_s27  ;;  %p1384_p4 = scmp.lt.s32.totalorder %s1378_s27, %s1378_s27 }
 0x2e8   :  { %v904_v37 = vadd.f32 %v903_v36, %v902_v30  ;;  %v940_v38 = vrot.slane %v939_v34, 4  ;;  %p1385_p5 = por %p1384_p4, %p1383_p3 }
 0x2ea   :  { %v905_v39 = vrot.slane %v904_v37, 2  ;;  %v941_v40 = vadd.f32 %v940_v38, %v939_v34  ;;  %p1386_p6 = pnand %p1385_p5, %p1379_p2 }
 0x2ec   :  { %v906_v41 = vadd.f32 %v905_v39, %v904_v37  ;;  %v942_v42 = vrot.slane %v941_v40, 2 }
 0x2ee   :  { %v907_v43 = vrot.slane %v906_v41, 1  ;;  %v943_v44 = vadd.f32 %v942_v42, %v941_v40 }
 0x2f0   :  { %v908_v45 = vadd.f32 %v907_v43, %v906_v41  ;;  %v944_v46 = vrot.slane %v943_v44, 1 }
 0x2f2   :  { %946 = vst [vmem:[#allocation14] sm:$0xff] %v908_v45  ;;  %v945_v47 = vadd.f32 %v944_v46, %v943_v44 }
 0x2f3   :  { %1389 = shalt.err (!%p1386_p6)
}
 0x2f4   :  { %969 = dma.vmem_to_hbm [thread:$0]  %s967_s25, 128, %s1622_s9, [#allocation15]   ;;  %947 = vst [vmem:[#allocation16] sm:$0xff] %v945_v47 }
 0x2f5   :  { %s1398_s29 = scalar_lea.vmem %s977_s8, 128  ;;  %p1403_p8 = scmp.lt.s32.totalorder %s977_s8, %s977_s8 }
 0x2f6   :  { %p1399_p7 = scmp.ne.s32.totalorder %s977_s8, %s1398_s29  ;;  %p1404_p9 = scmp.lt.s32.totalorder %s1398_s29, %s1398_s29 }
 0x2f8   :  { %p1405_p10 = por %p1404_p9, %p1403_p8 }
 0x2fa   :  { %p1406_p11 = pnand %p1405_p10, %p1399_p7 }
 0x2fc   :  { %1409 = shalt.err (!%p1406_p11)
}
 0x2fd   :  { %979 = dma.vmem_to_hbm [thread:$0]  %s977_s8, 128, %s1623_s10, [#allocation15]  }
 0x2fe   :  { %1424 = dma.done.wait [#allocation6], 2048  }
 0x2ff   :  { %1425 = vsyncadd [#allocation6], 4294965248 }
 0x300   :  { %1426 = dma.done.wait [#allocation15], 256  }
 0x301   :  { %1427 = vsyncadd [#allocation15], 4294967040 }
 0x302   :  { %989 = vsyncpa [#allocation5], 1 }
 0x303   :  { %990 = vsyncpa [#allocation8], 1 }
 0x304   :  { %991 = vsyncpa [#allocation11], 1 }
 0x305   :  { %992 = vsyncpa [#allocation6], 1 }
 0x306   :  { %993 = vsyncpa [#allocation15], 1 }

</bundles_post_ra>
